<compile_context>
chip_gen: v7x
topology: tpu7x:2x2x1
jax: 0.10.0
libtpu: 0.0.40
codegen_flags: <defaults>
</compile_context>

<pallas_src>
import jax
import jax.numpy as jnp
from jax.experimental import pallas as pl
from jax.experimental.pallas import tpu as pltpu


def _round_up(x, m):
    return (x + m - 1) // m * m


def _pick_tile(size, base, max_tile):
    """Largest multiple of `base` that divides round_up(size, base), <= max_tile."""
    padded = _round_up(size, base)
    best = base
    t = base
    while t <= min(padded, max_tile):
        if padded % t == 0:
            best = t
        t += base
    return best, padded


# ---------------------------------------------------------------------------
# Kernels
# ---------------------------------------------------------------------------

def _linear_kernel_single_k(x_ref, wt_ref, b_ref, o_ref):
    # Entire reduction dim fits in one tile: no accumulator round trip.
    acc = jnp.dot(x_ref[...].astype(wt_ref.dtype), wt_ref[...],
                  preferred_element_type=jnp.float32)
    o_ref[...] = (acc + b_ref[...]).astype(o_ref.dtype)


def _linear_kernel_multi_k(x_ref, wt_ref, b_ref, o_ref, acc_ref):
    # x_ref: (tm, tk)  wt_ref: (tk, tn)  b_ref: (1, tn)  o_ref: (tm, tn)
    # acc_ref: (tm, tn) f32 scratch, resident across the K grid axis (last axis).
    k = pl.program_id(2)
    prod = jnp.dot(x_ref[...].astype(wt_ref.dtype), wt_ref[...],
                   preferred_element_type=jnp.float32)

    @pl.when(k == 0)
    def _():
        acc_ref[...] = prod          # init with first product; no zero store

    @pl.when(k != 0)
    def _():
        acc_ref[...] += prod

    @pl.when(k == pl.num_programs(2) - 1)
    def _():
        # Bias added exactly once, on the final reduction step.
        o_ref[...] = (acc_ref[...] + b_ref[...]).astype(o_ref.dtype)


# ---------------------------------------------------------------------------
# Parameter preparation (one-time, per layer)
# ---------------------------------------------------------------------------

def prepare_linear_params(weight, bias=None, *, use_bf16_mxu=False):
    """One-time parameter setup.

    weight: PyTorch-style (out_features, in_features)
    bias:   (out_features,) or None (nn.Linear(bias=False))
    use_bf16_mxu: store the weight in bf16 so the MXU runs at bf16 peak and
                  weight HBM traffic is halved (f32 accumulation is kept).

    The weight is transposed to a lane-dense (in, out) layout, zero-padded to
    multiples of 128 on both dims, and the bias padded to a multiple of 128 —
    all here, so the forward pass never pays an extra HBM pass for it.
    """
    weight = jnp.asarray(weight, dtype=jnp.float32)
    out_f, in_f = weight.shape
    if bias is None:
        bias = jnp.zeros((out_f,), jnp.float32)
    bias = jnp.asarray(bias, dtype=jnp.float32)

    kp = _round_up(in_f, 128)
    np_ = _round_up(out_f, 128)

    wt = weight.T                                           # (in, out), lane-dense out
    if (kp != in_f) or (np_ != out_f):
        wt = jnp.pad(wt, ((0, kp - in_f), (0, np_ - out_f)))
    if use_bf16_mxu:
        wt = wt.astype(jnp.bfloat16)

    b = bias if np_ == out_f else jnp.pad(bias, (0, np_ - out_f))

    return {
        "weight_t": wt,               # (Kp, Np), f32 or bf16
        "bias": b.reshape(1, np_),    # (1, Np), f32 (bias always added in f32)
        "in_features": in_f,
        "out_features": out_f,
    }


# ---------------------------------------------------------------------------
# Forward
# ---------------------------------------------------------------------------

def custom_linear(x, params, *, tm_max=512, tn_max=1024, tk_max=1024):
    """Forward pass: y = x @ W^T + b.

    x:      (B, in_features)
    params: dict from prepare_linear_params
    returns (B, out_features)
    """
    wt = params["weight_t"]
    b = params["bias"]
    IN = params["in_features"]
    OUT = params["out_features"]

    B, in_x = x.shape
    assert in_x == IN, (in_x, IN)
    Kp, Np = wt.shape

    use_bf16 = wt.dtype == jnp.bfloat16
    m_base = 16 if use_bf16 else 8      # bf16 sublane packing wants tm % 16 == 0

    # Tiles chosen to divide the (already rounded) dims — no wasted padded tiles.
    tm, Mp = _pick_tile(B, m_base, tm_max)
    tn, _ = _pick_tile(Np, 128, tn_max)
    tk, _ = _pick_tile(Kp, 128, tk_max)

    # v7x megacore: if the parallel (M, N) grid collapsed to a single block,
    # halve the M (preferred) or N tile so both TensorCores get work.
    if (Mp // tm) * (Np // tn) == 1:
        if tm % (2 * m_base) == 0:
            tm //= 2
        elif tn % 256 == 0:
            tn //= 2

    # Per-call padding of x only (weight/bias already padded at prep time),
    # and only when actually needed. Zero padding is exact for matmul + bias.
    if (Mp != B) or (Kp != IN):
        x_in = jnp.pad(x, ((0, Mp - B), (0, Kp - IN)))
    else:
        x_in = x

    grid_m = Mp // tm
    grid_n = Np // tn
    grid_k = Kp // tk

    out_dtype = x.dtype
    x_bytes = x.dtype.itemsize
    w_bytes = wt.dtype.itemsize
    o_bytes = jnp.dtype(out_dtype).itemsize

    # Actual streamed traffic: x is re-read once per N block, W once per M block.
    flops = 2 * Mp * Kp * Np
    bytes_accessed = (grid_n * Mp * Kp * x_bytes
                      + grid_m * Kp * Np * w_bytes
                      + grid_m * Np * 4
                      + Mp * Np * o_bytes)

    # Double-buffered inputs/outputs + f32 accumulator; leave the cap well under
    # the v7x 64 MiB physical VMEM (v5e/v6e have 128 MiB).
    vmem_needed = (2 * (tm * tk * x_bytes + tk * tn * w_bytes + tn * 4)
                   + 2 * tm * tn * o_bytes + tm * tn * 4)
    vmem_limit = int(min(max(int(vmem_needed * 1.5), 32 * 1024 * 1024),
                         56 * 1024 * 1024))

    if grid_k == 1:
        # Whole K in one tile: write (dot + bias) directly, no accumulator.
        grid_spec = pltpu.PrefetchScalarGridSpec(
            num_scalar_prefetch=0,
            grid=(grid_m, grid_n),
            in_specs=[
                pl.BlockSpec((tm, tk), lambda i, j: (i, 0)),   # x tile
                pl.BlockSpec((tk, tn), lambda i, j: (0, j)),   # W^T tile
                pl.BlockSpec((1, tn), lambda i, j: (0, j)),    # bias tile
            ],
            out_specs=pl.BlockSpec((tm, tn), lambda i, j: (i, j)),
        )
        kernel = _linear_kernel_single_k
        dim_sem = ("parallel", "parallel")
    else:
        grid_spec = pltpu.PrefetchScalarGridSpec(
            num_scalar_prefetch=0,
            grid=(grid_m, grid_n, grid_k),                     # K (reduction) last
            in_specs=[
                pl.BlockSpec((tm, tk), lambda i, j, k: (i, k)),  # x tile
                pl.BlockSpec((tk, tn), lambda i, j, k: (k, j)),  # W^T tile
                pl.BlockSpec((1, tn), lambda i, j, k: (0, j)),   # bias tile
            ],
            out_specs=pl.BlockSpec((tm, tn), lambda i, j, k: (i, j)),
            scratch_shapes=[pltpu.VMEM((tm, tn), jnp.float32)],
        )
        kernel = _linear_kernel_multi_k
        dim_sem = ("parallel", "parallel", "arbitrary")

    out_p = pl.pallas_call(
        kernel,
        out_shape=jax.ShapeDtypeStruct((Mp, Np), out_dtype),
        grid_spec=grid_spec,
        compiler_params=pltpu.CompilerParams(
            dimension_semantics=dim_sem,
            vmem_limit_bytes=vmem_limit),
        cost_estimate=pl.CostEstimate(
            flops=flops, transcendentals=0, bytes_accessed=bytes_accessed),
    )(x_in, wt, b)

    if (Mp != B) or (Np != OUT):
        out_p = out_p[:B, :OUT]
    return out_p


# ---------------------------------------------------------------------------
# Self-test
# ---------------------------------------------------------------------------

if __name__ == "__main__":
    key = jax.random.PRNGKey(0)
    keys = jax.random.split(key, 9)

    # --- Small shapes consistent with the module: batch=8, in=32, out=16 ------
    B, IN, OUT = 8, 32, 16
    x = jax.random.normal(keys[0], (B, IN), dtype=jnp.float32)
    bound = 1.0 / (IN ** 0.5)
    weight = jax.random.uniform(keys[1], (OUT, IN), minval=-bound, maxval=bound,
                                dtype=jnp.float32)
    bias = jax.random.uniform(keys[2], (OUT,), minval=-bound, maxval=bound,
                              dtype=jnp.float32)

    params = prepare_linear_params(weight, bias)       # one-time transpose + pad
    y = jax.block_until_ready(custom_linear(x, params))
    y_ref = x @ weight.T + bias
    assert y.shape == (B, OUT)
    assert jnp.allclose(y, y_ref, atol=1e-5, rtol=1e-5)

    # --- Larger f32 shapes: exercises multi-K accumulator + megacore split ----
    B2, IN2, OUT2 = 256, 2048, 512
    x2 = jax.random.normal(keys[3], (B2, IN2), dtype=jnp.float32)
    bound2 = 1.0 / (IN2 ** 0.5)
    weight2 = jax.random.uniform(keys[4], (OUT2, IN2), minval=-bound2,
                                 maxval=bound2, dtype=jnp.float32)
    bias2 = jax.random.uniform(keys[5], (OUT2,), minval=-bound2, maxval=bound2,
                               dtype=jnp.float32)
    params2 = prepare_linear_params(weight2, bias2)
    y2 = jax.block_until_ready(custom_linear(x2, params2))
    y2_ref = x2 @ weight2.T + bias2
    assert y2.shape == (B2, OUT2)
    assert jnp.allclose(y2, y2_ref, atol=2e-2, rtol=2e-2)

    # --- bf16-MXU path on a non-power-of-2 OUT (tn=640, tm covers all of B) ---
    B3, IN3, OUT3 = 384, 1024, 640
    x3 = jax.random.normal(keys[6], (B3, IN3), dtype=jnp.float32)
    bound3 = 1.0 / (IN3 ** 0.5)
    weight3 = jax.random.uniform(keys[7], (OUT3, IN3), minval=-bound3,
                                 maxval=bound3, dtype=jnp.float32)
    bias3 = jax.random.uniform(keys[8], (OUT3,), minval=-bound3, maxval=bound3,
                               dtype=jnp.float32)
    params3 = prepare_linear_params(weight3, bias3, use_bf16_mxu=True)
    y3 = jax.block_until_ready(custom_linear(x3, params3))
    y3_ref = x3 @ weight3.T + bias3
    assert y3.shape == (B3, OUT3)
    assert jnp.allclose(y3, y3_ref, atol=3e-2, rtol=3e-2)

    print("KERNEL_OK")
</pallas_src>

<mosaic_0001>
module attributes {stable_mosaic.version = 11 : i64} {
  func.func @_linear_kernel_single_k(%arg0: i32, %arg1: i32, %arg2: memref<8x128xf32, #tpu.memory_space<vmem>>, %arg3: memref<128x128xf32, #tpu.memory_space<vmem>>, %arg4: memref<1x128xf32, #tpu.memory_space<vmem>>, %arg5: memref<8x128xf32, #tpu.memory_space<vmem>>) attributes {dimension_semantics = [#tpu.dimension_semantics<parallel>, #tpu.dimension_semantics<parallel>], iteration_bounds = array<i64: 1, 1>, scalar_prefetch = 0 : i64, scratch_operands = 0 : i64, tpu.core_type = #tpu.core_type<tc>, window_params = [{transform_indices = @transform_0, window_bounds = array<i64: 8, 128>}, {transform_indices = @transform_1, window_bounds = array<i64: 128, 128>}, {transform_indices = @transform_2, window_bounds = array<i64: 1, 128>}, {transform_indices = @transform_3, window_bounds = array<i64: 8, 128>}]} {
    %c0 = arith.constant 0 : index
    %c0_0 = arith.constant 0 : index
    %0 = vector.load %arg2[%c0, %c0_0] : memref<8x128xf32, #tpu.memory_space<vmem>>, vector<8x128xf32>
    %c0_1 = arith.constant 0 : index
    %c0_2 = arith.constant 0 : index
    %1 = vector.load %arg3[%c0_1, %c0_2] : memref<128x128xf32, #tpu.memory_space<vmem>>, vector<128x128xf32>
    %cst = arith.constant dense<0.000000e+00> : vector<8x128xf32>
    %2 = tpu.matmul %0, %1, %cst {dimension_numbers = #tpu.dot_dimension_numbers<[1], [0], [0], [1], [0, 0, 1, 1], [], []>} : vector<8x128xf32>, vector<128x128xf32>, vector<8x128xf32> -> vector<8x128xf32>
    %c0_3 = arith.constant 0 : index
    %c0_4 = arith.constant 0 : index
    %3 = vector.load %arg4[%c0_3, %c0_4] : memref<1x128xf32, #tpu.memory_space<vmem>>, vector<1x128xf32>
    %4 = vector.broadcast %3 : vector<1x128xf32> to vector<8x128xf32>
    %5 = arith.addf %2, %4 : vector<8x128xf32>
    %c0_5 = arith.constant 0 : index
    %c0_6 = arith.constant 0 : index
    %6 = vector.load %arg5[%c0_5, %c0_6] : memref<8x128xf32, #tpu.memory_space<vmem>>, vector<8x128xf32>
    tpu.vector_store %arg5[%c0_5, %c0_6], %5 {strides = array<i32>} : memref<8x128xf32, #tpu.memory_space<vmem>>, vector<8x128xf32>,
    return
  }
  func.func @transform_0(%arg0: i32, %arg1: i32) -> (i32, i32) {
    %c0_i32 = arith.constant 0 : i32
    %c0_i32_0 = arith.constant 0 : i32
    return %arg0, %c0_i32 : i32, i32
  }
  func.func @transform_1(%arg0: i32, %arg1: i32) -> (i32, i32) {
    %c0_i32 = arith.constant 0 : i32
    %c0_i32_0 = arith.constant 0 : i32
    return %c0_i32, %arg1 : i32, i32
  }
  func.func @transform_2(%arg0: i32, %arg1: i32) -> (i32, i32) {
    %c0_i32 = arith.constant 0 : i32
    %c0_i32_0 = arith.constant 0 : i32
    return %c0_i32, %arg1 : i32, i32
  }
  func.func @transform_3(%arg0: i32, %arg1: i32) -> (i32, i32) {
    %c0_i32 = arith.constant 0 : i32
    return %arg0, %arg1 : i32, i32
  }
}

</mosaic_0001>

<bundles_post_ra>
// kernel: tpu_custom_call.1
= control target key start
LH: loop header
LB: loop body
LE: loop exit
PB: predicated region body
PF: predicated region fallthrough
CT: control target
= control target key end

     0   :  { %8 = vsyncpa [#allocation3], 0  ;;  %s383_s0 = inlined_call_operand.hbm [shape: f32[8,128], index: 0, kind: input, shape index: {}]   ;;  %s384_s1 = inlined_call_operand.hbm [shape: f32[128,128], index: 1, kind: input, shape index: {}]   ;;  %s385_s2 = inlined_call_operand.vmem [shape: f32[1,128], index: 2, kind: input, shape index: {}]   ;;  %s386_s3 = inlined_call_operand.hbm [shape: f32[8,128], index: 3, kind: output, shape index: {}]  }
   0x1   :  { %9 = vsyncpa [#allocation6], 0 }
   0x2   :  { %10 = vsyncpa [#allocation4], 0  ;;  %s309_s12 = smov [#allocation2]   ;;  %s310_s14 = smov [#allocation5]  }
   0x3   :  { %s17_s13 = sshll.u32 %s309_s12, 4  ;;  %s26_s15 = sshll.u32 %s310_s14, 4  ;;  %s18_s13 = int_to_ptr.vmem [resolvable:$true] %s17_s13  ;;  %s337_s15 = int_to_ptr.vmem [resolvable:$true] %s26_s15 }
   0x4   :  { %s237_s18 = scalar_lea.hbm %s383_s0, 128 }
   0x5   :  { %p238_p0 = scmp.ne.s32.totalorder %s383_s0, %s237_s18  ;;  %p241_p1 = scmp.lt.u32.totalorder %s237_s18, %s383_s0 }
   0x7   :  { %p243_p2 = pnand %p241_p1, %p238_p0 }
   0x9   :  { %246 = shalt.err (!%p243_p2)
}
   0xa   :  { %s247_s23 = scalar_lea.vmem %s18_s13, 128  ;;  %p252_p4 = scmp.lt.s32.totalorder %s18_s13, %s18_s13 }
   0xb   :  { %p248_p3 = scmp.ne.s32.totalorder %s18_s13, %s247_s23  ;;  %p253_p5 = scmp.lt.s32.totalorder %s247_s23, %s247_s23 }
   0xd   :  { %p254_p6 = por %p253_p5, %p252_p4 }
   0xf   :  { %p255_p7 = pnand %p254_p6, %p248_p3 }
  0x11   :  { %258 = shalt.err (!%p255_p7)
}
  0x12   :  { %20 = dma.hbm_to_vmem [thread:$0]  %s383_s0, 128, %s18_s13, [#allocation3]  }
  0x13   :  { %s259_s28 = scalar_lea.hbm %s384_s1, 2048 }
  0x14   :  { %p260_p8 = scmp.ne.s32.totalorder %s384_s1, %s259_s28  ;;  %p263_p9 = scmp.lt.u32.totalorder %s259_s28, %s384_s1 }
  0x16   :  { %p265_p10 = pnand %p263_p9, %p260_p8 }
  0x18   :  { %268 = shalt.err (!%p265_p10)
}
  0x19   :  { %s269_s6 = scalar_lea.vmem %s337_s15, 2048  ;;  %p274_p12 = scmp.lt.s32.totalorder %s337_s15, %s337_s15 }
  0x1a   :  { %p270_p11 = scmp.ne.s32.totalorder %s337_s15, %s269_s6  ;;  %p275_p13 = scmp.lt.s32.totalorder %s269_s6, %s269_s6 }
  0x1c   :  { %p276_p0 = por %p275_p13, %p274_p12 }
  0x1e   :  { %p277_p1 = pnand %p276_p0, %p270_p11 }
  0x20   :  { %280 = shalt.err (!%p277_p1)
}
  0x21   :  { %s311_s0 = smov 128   ;;  %s312_s7 = smov 8  }
  0x22   :  { %32 = dma.hbm_to_vmem [thread:$0]  %s384_s1, 2048, %s337_s15, [#allocation6], %s311_s0, %s311_s0, %s312_s7  }
  0x23   :  { %303 = dma.done.wait [#allocation3], 128  }
  0x24   :  { %304 = vsyncadd [#allocation3], 4294967168 }
  0x25   :  { %305 = dma.done.wait [#allocation6], 2048  }
  0x26   :  { %306 = vsyncadd [#allocation6], 4294965248  ;;  %v313_v0 = vmov 0.0|0.0   ;;  %vm314_vm0 = vmmov 0   ;;  %v315_v1 = vmov 0.0   ;;  %v42_v2 = vld [vmem:[#allocation5] sm:$0xff] }
  0x27   :  { %205 = vmatprep.subr.bf16.mxu0 %v313_v0  ;;  %202 = vmatprep.mubr.msk.f32.mxu0 %vm314_vm0, %v315_v1  ;;  %v43_v3 = vld [vmem:[#allocation5 + $0x8] sm:$0xff]  ;;  %v44_v4 = vld [vmem:[#allocation5 + $0x10] sm:$0xff]  ;;  %v45_v6 = vld [vmem:[#allocation5 + $0x18] sm:$0xff]  ;;  %s316_s11 = smov [#allocation7]  }
  0x28   :  { %v206_v5 = vpack.c.bf16 %v43_v3, %v42_v2  ;;  %v209_v7 = vpack.c.bf16 %v45_v6, %v44_v4  ;;  %v46_v8 = vld [vmem:[#allocation5 + $0x20] sm:$0xff]  ;;  %v47_v9 = vld [vmem:[#allocation5 + $0x28] sm:$0xff]  ;;  %v48_v11 = vld [vmem:[#allocation5 + $0x30] sm:$0xff]  ;;  %s142_s12 = sshll.u32 %s316_s11, 4  ;;  %s143_s12 = int_to_ptr.vmem [resolvable:$true] %s142_s12 }
  0x29   :  { %v212_v10 = vpack.c.bf16 %v47_v9, %v46_v8  ;;  %v49_v12 = vld [vmem:[#allocation5 + $0x38] sm:$0xff]  ;;  %v50_v14 = vld [vmem:[#allocation5 + $0x40] sm:$0xff]  ;;  %v51_v15 = vld [vmem:[#allocation5 + $0x48] sm:$0xff]  ;;  %s281_s13 = scalar_lea.vmem %s143_s12, 128  ;;  %p286_p3 = scmp.lt.s32.totalorder %s143_s12, %s143_s12 }
  0x2a   :  { %207 = vmatpush3.bf16.msra.mxu0 %v206_v5  ;;  %v215_v13 = vpack.c.bf16 %v49_v12, %v48_v11  ;;  %v218_v16 = vpack.c.bf16 %v51_v15, %v50_v14  ;;  %v52_v17 = vld [vmem:[#allocation5 + $0x50] sm:$0xff]  ;;  %v53_v18 = vld [vmem:[#allocation5 + $0x58] sm:$0xff]  ;;  %v54_v20 = vld [vmem:[#allocation5 + $0x60] sm:$0xff]  ;;  %p282_p2 = scmp.ne.s32.totalorder %s143_s12, %s281_s13  ;;  %p287_p4 = scmp.lt.s32.totalorder %s281_s13, %s281_s13 }
  0x2b   :  { %208 = vmatprep.subr.bf16.mxu0 %v313_v0  ;;  %v221_v19 = vpack.c.bf16 %v53_v18, %v52_v17  ;;  %v55_v21 = vld [vmem:[#allocation5 + $0x68] sm:$0xff]  ;;  %v56_v23 = vld [vmem:[#allocation5 + $0x70] sm:$0xff]  ;;  %v57_v24 = vld [vmem:[#allocation5 + $0x78] sm:$0xff] }
  0x2c   :  { %v224_v22 = vpack.c.bf16 %v55_v21, %v54_v20  ;;  %v227_v25 = vpack.c.bf16 %v57_v24, %v56_v23  ;;  %v41_v26 = vld [vmem:[#allocation2] sm:$0xff]  ;;  %p288_p5 = por %p287_p4, %p286_p3 }
  0x2d   :  { %v152_v27 = vld [vmem:[%s385_s2] ss:$0 sm:$0xff] }
  0x2e   :  { %210 = vmatpush3.bf16.msra.mxu0 %v209_v7  ;;  %p289_p6 = pnand %p288_p5, %p282_p2 }
  0x2f   :  { %211 = vmatprep.subr.bf16.mxu0 %v313_v0 }
  0x32   :  { %213 = vmatpush3.bf16.msra.mxu0 %v212_v10 }
  0x33   :  { %214 = vmatprep.subr.bf16.mxu0 %v313_v0 }
  0x36   :  { %216 = vmatpush3.bf16.msra.mxu0 %v215_v13 }
  0x37   :  { %217 = vmatprep.subr.bf16.mxu0 %v313_v0 }
  0x3a   :  { %219 = vmatpush3.bf16.msra.mxu0 %v218_v16 }
  0x3b   :  { %220 = vmatprep.subr.bf16.mxu0 %v313_v0 }
  0x3e   :  { %222 = vmatpush3.bf16.msra.mxu0 %v221_v19 }
  0x3f   :  { %223 = vmatprep.subr.bf16.mxu0 %v313_v0 }
  0x42   :  { %225 = vmatpush3.bf16.msra.mxu0 %v224_v22 }
  0x43   :  { %226 = vmatprep.subr.bf16.mxu0 %v313_v0 }
  0x46   :  { %228 = vmatpush3.bf16.msra.mxu0 %v227_v25 }
  0x49   :  { %203 = vmatmul.mubr.f32.vlgmr.msra.gmra.mrb[0].mxu0 %v41_v26 }
 0x11c   :  { %v131_v28 = vpop.f32.mrb[0].mxu0 }
 0x11d   :  { %v132_v29 = vadd.f32 %v152_v27, %v131_v28  ;;  %v204_v30 = vpop.f32.mrb[1].mxu0 }
 0x11f   :  { %135 = vst [vmem:[#allocation7] sm:$0xff] %v132_v29 }
 0x120   :  { %292 = shalt.err (!%p289_p6)
}
 0x121   :  { %s293_s16 = scalar_lea.hbm %s386_s3, 128 }
 0x122   :  { %p294_p7 = scmp.ne.s32.totalorder %s386_s3, %s293_s16  ;;  %p297_p8 = scmp.lt.u32.totalorder %s293_s16, %s386_s3 }
 0x124   :  { %p299_p9 = pnand %p297_p8, %p294_p7 }
 0x126   :  { %302 = shalt.err (!%p299_p9)
}
 0x127   :  { %145 = dma.vmem_to_hbm [thread:$0]  %s143_s12, 128, %s386_s3, [#allocation4]  }
 0x128   :  { %307 = dma.done.wait [#allocation4], 128  }
 0x129   :  { %308 = vsyncadd [#allocation4], 4294967168 }
 0x12a   :  { %149 = vsyncpa [#allocation3], 1 }
 0x12b   :  { %150 = vsyncpa [#allocation6], 1 }
 0x12c   :  { %151 = vsyncpa [#allocation4], 1 }

</bundles_post_ra>
